<compile_context>
chip_gen: v5e
topology: v5e:2x2
jax: 0.10.0
libtpu: 0.0.40
codegen_flags: <defaults>
</compile_context>

<pallas_src>
import jax
import jax.numpy as jnp
from jax.experimental import pallas as pl
from jax.experimental.pallas import tpu as pltpu

EPS = 1e-5


def _round_up(x, m):
    return ((x + m - 1) // m) * m


def _layernorm_relu(h, gamma, beta):
    # LayerNorm (biased variance, eps=1e-5, torch default) + ReLU, all in f32.
    mu = jnp.mean(h, axis=-1, keepdims=True)
    var = jnp.mean((h - mu) ** 2, axis=-1, keepdims=True)
    h = (h - mu) * jax.lax.rsqrt(var + EPS) * gamma + beta
    return jnp.maximum(h, 0.0)


def combiner_kernel(gene_ref, metab_ref, w1a_ref, w1b_ref, w2_ref, vecs_ref, out_ref):
    # Per-channel vectors (f32), stacked as rows: b1, gamma1, beta1, b2, gamma2, beta2.
    vecs = vecs_ref[...]
    b1, g1, be1 = vecs[0:1, :], vecs[1:2, :], vecs[2:3, :]
    b2, g2, be2 = vecs[3:4, :], vecs[4:5, :], vecs[5:6, :]

    # Linear(2H -> H) with the concat fused as two dots. Operands keep their
    # native dtype (f32 or bf16) so the bf16 MXU path is used when requested;
    # accumulation is always f32 via preferred_element_type.
    h = (
        jnp.dot(gene_ref[...], w1a_ref[...], preferred_element_type=jnp.float32)
        + jnp.dot(metab_ref[...], w1b_ref[...], preferred_element_type=jnp.float32)
        + b1
    )
    h = _layernorm_relu(h, g1, be1)

    # Linear(H -> H). Cast the f32 LN output to the weight dtype so bf16 weights
    # keep the bf16 MXU path (no-op for f32 weights).
    h2 = (
        jnp.dot(h.astype(w2_ref.dtype), w2_ref[...],
                preferred_element_type=jnp.float32)
        + b2
    )
    h2 = _layernorm_relu(h2, g2, be2)

    out_ref[...] = h2.astype(out_ref.dtype)


def combiner_forward(gene, metab, params, *, row_tile=None, compute_dtype=None):
    """gene, metab: [N, H]. Returns [N, H] float32."""
    N, H = gene.shape
    assert metab.shape == (N, H)
    w1a, w1b, b1, g1, be1, w2, b2, g2, be2 = params

    # Optional reduced-precision MXU operands (f32 accumulate, f32 LayerNorm).
    if compute_dtype is not None:
        gene = gene.astype(compute_dtype)
        metab = metab.astype(compute_dtype)
        w1a = w1a.astype(compute_dtype)
        w1b = w1b.astype(compute_dtype)
        w2 = w2.astype(compute_dtype)

    act_dtype = gene.dtype
    a_bytes = jnp.dtype(act_dtype).itemsize
    w_bytes = jnp.dtype(w1a.dtype).itemsize
    sub = 16 if a_bytes == 2 else 8  # sublane packing for the activation dtype

    # Row tile: big enough that each activation DMA is ~1 MiB (mem-bound regime
    # wants large transfers), sublane-aligned, capped, never beyond the batch.
    if row_tile is None:
        row_tile = max(256, (1 << 20) // max(1, H * a_bytes))
    rt = _round_up(min(int(row_tile), 1 << 14), sub)
    rt = min(rt, _round_up(N, sub))
    n_pad = _round_up(N, rt)
    if n_pad != N:
        pad = ((0, n_pad - N), (0, 0))
        gene = jnp.pad(gene, pad)
        metab = jnp.pad(metab, pad)
    grid = n_pad // rt

    # Stack the six per-channel vectors into one constant block (fewer tiny DMAs).
    vecs = jnp.concatenate([b1, g1, be1, b2, g2, be2], axis=0).astype(jnp.float32)

    vmem_est = (
        2 * 2 * rt * H * a_bytes      # gene + metab tiles, double buffered
        + 2 * rt * H * 4              # out tile (f32), double buffered
        + 2 * 3 * H * H * w_bytes     # W1a, W1b, W2 (allow 2 bufs worst case)
        + 2 * 6 * H * 4               # stacked per-channel vectors
    )
    vmem_limit = int(min(max(2 * vmem_est + (4 << 20), 32 << 20), 64 << 20))

    try:
        cost = pl.CostEstimate(
            flops=6 * n_pad * H * H,
            transcendentals=2 * n_pad,
            bytes_accessed=3 * n_pad * H * a_bytes + 3 * H * H * w_bytes + 6 * H * 4,
        )
    except Exception:
        cost = None

    def build_and_run(single_buffer_consts):
        row_spec = pl.BlockSpec((rt, H), lambda i: (i, 0))

        def const_spec(shape):
            # Constant blocks (same index every grid step): single buffer saves VMEM.
            if single_buffer_consts:
                return pl.BlockSpec(shape, lambda i: (0, 0),
                                    pipeline_mode=pl.Buffered(1))
            return pl.BlockSpec(shape, lambda i: (0, 0))

        call = pl.pallas_call(
            combiner_kernel,
            out_shape=jax.ShapeDtypeStruct((n_pad, H), jnp.float32),
            grid_spec=pltpu.PrefetchScalarGridSpec(
                num_scalar_prefetch=0,
                grid=(grid,),
                in_specs=[
                    row_spec,                # gene rows
                    row_spec,                # metab rows
                    const_spec((H, H)),      # w1a (top half of W1: 2H x H)
                    const_spec((H, H)),      # w1b (bottom half of W1)
                    const_spec((H, H)),      # w2
                    const_spec((6, H)),      # stacked b1,g1,be1,b2,g2,be2
                ],
                out_specs=row_spec,
            ),
            compiler_params=pltpu.CompilerParams(
                dimension_semantics=("parallel",),
                vmem_limit_bytes=vmem_limit,
            ),
            cost_estimate=cost,
        )
        res = call(gene, metab, w1a, w1b, w2, vecs)
        return jax.block_until_ready(res)

    try:
        out = build_and_run(True)
    except Exception:
        # Fallback for JAX versions without BlockSpec pipeline_mode / Buffered(1).
        out = build_and_run(False)

    return out[:N]


def combiner_reference(gene, metab, params, compute_dtype=None):
    """Pure-JAX reference with the same dtype policy as the kernel."""
    w1a, w1b, b1, g1, be1, w2, b2, g2, be2 = params
    cd = compute_dtype if compute_dtype is not None else gene.dtype
    xg, xm = gene.astype(cd), metab.astype(cd)
    h = (
        jnp.dot(xg, w1a.astype(cd), preferred_element_type=jnp.float32)
        + jnp.dot(xm, w1b.astype(cd), preferred_element_type=jnp.float32)
        + b1
    )
    h = _layernorm_relu(h, g1, be1)
    h2 = (
        jnp.dot(h.astype(cd), w2.astype(cd), preferred_element_type=jnp.float32)
        + b2
    )
    return _layernorm_relu(h2, g2, be2)


def init_params(key, hidden_channels):
    """Deterministic synthetic init matching the PyTorch module's shapes."""
    H = hidden_channels
    ks = jax.random.split(key, 4)
    # Linear(2H, H): torch weight is [H, 2H]; stored transposed [2H, H], split into
    # the gene half and metabolism half (concat fused into the matmul).
    bound1 = 1.0 / jnp.sqrt(2.0 * H)
    w1 = jax.random.uniform(ks[0], (2 * H, H), jnp.float32, -bound1, bound1)
    b1 = jax.random.uniform(ks[1], (1, H), jnp.float32, -bound1, bound1)
    w1a, w1b = w1[:H, :], w1[H:, :]
    # Linear(H, H)
    bound2 = 1.0 / jnp.sqrt(1.0 * H)
    w2 = jax.random.uniform(ks[2], (H, H), jnp.float32, -bound2, bound2)
    b2 = jax.random.uniform(ks[3], (1, H), jnp.float32, -bound2, bound2)
    # LayerNorm affine params (torch default init: ones / zeros)
    g1 = jnp.ones((1, H), jnp.float32)
    be1 = jnp.zeros((1, H), jnp.float32)
    g2 = jnp.ones((1, H), jnp.float32)
    be2 = jnp.zeros((1, H), jnp.float32)
    return (w1a, w1b, b1, g1, be1, w2, b2, g2, be2)


if __name__ == "__main__":
    key = jax.random.PRNGKey(0)
    k_gene, k_metab, k_params, k_gene2, k_metab2 = jax.random.split(key, 5)

    # Small demo consistent with the module: hidden_channels=32, 8 nodes.
    H = 32
    N = 8
    gene = jax.random.normal(k_gene, (N, H), jnp.float32)
    metab = jax.random.normal(k_metab, (N, H), jnp.float32)
    params = init_params(k_params, H)

    out = combiner_forward(gene, metab, params)
    jax.block_until_ready(out)
    ref = combiner_reference(gene, metab, params)
    assert out.shape == (N, H)
    assert jnp.allclose(out, ref, atol=1e-4, rtol=1e-4)

    # Larger, non-multiple batch: exercises row padding + multi-step pipelined grid.
    N2 = 300
    gene2 = jax.random.normal(k_gene2, (N2, H), jnp.float32)
    metab2 = jax.random.normal(k_metab2, (N2, H), jnp.float32)

    # Default adaptive tile (single grid step here).
    out2 = combiner_forward(gene2, metab2, params)
    jax.block_until_ready(out2)
    ref2 = combiner_reference(gene2, metab2, params)
    assert out2.shape == (N2, H)
    assert jnp.allclose(out2, ref2, atol=1e-4, rtol=1e-4)

    # Explicit small tile: multi-step grid with padded tail.
    out2b = combiner_forward(gene2, metab2, params, row_tile=128)
    jax.block_until_ready(out2b)
    assert jnp.allclose(out2b, ref2, atol=1e-4, rtol=1e-4)

    # bf16 MXU-operand path (f32 accumulate + f32 LayerNorm).
    out3 = combiner_forward(gene2, metab2, params, row_tile=128,
                            compute_dtype=jnp.bfloat16)
    jax.block_until_ready(out3)
    ref3 = combiner_reference(gene2, metab2, params, compute_dtype=jnp.bfloat16)
    assert out3.shape == (N2, H)
    assert bool(jnp.all(jnp.isfinite(out3)))
    assert jnp.allclose(out3, ref3, atol=3e-2, rtol=3e-2)

    print("KERNEL_OK")
</pallas_src>

<mosaic_0001>
module attributes {stable_mosaic.version = 11 : i64} {
  func.func @combiner_kernel(%arg0: i32, %arg1: memref<8x32xf32, #tpu.memory_space<vmem>>, %arg2: memref<8x32xf32, #tpu.memory_space<vmem>>, %arg3: memref<32x32xf32, #tpu.memory_space<vmem>>, %arg4: memref<32x32xf32, #tpu.memory_space<vmem>>, %arg5: memref<32x32xf32, #tpu.memory_space<vmem>>, %arg6: memref<6x32xf32, #tpu.memory_space<vmem>>, %arg7: memref<8x32xf32, #tpu.memory_space<vmem>>) attributes {dimension_semantics = [#tpu.dimension_semantics<parallel>], iteration_bounds = array<i64: 1>, scalar_prefetch = 0 : i64, scratch_operands = 0 : i64, tpu.core_type = #tpu.core_type<tc>, window_params = [{transform_indices = @transform_0, window_bounds = array<i64: 8, 32>}, {transform_indices = @transform_1, window_bounds = array<i64: 8, 32>}, {pipeline_mode = #tpu.pipeline_mode<synchronous>, transform_indices = @transform_2, window_bounds = array<i64: 32, 32>}, {pipeline_mode = #tpu.pipeline_mode<synchronous>, transform_indices = @transform_3, window_bounds = array<i64: 32, 32>}, {pipeline_mode = #tpu.pipeline_mode<synchronous>, transform_indices = @transform_4, window_bounds = array<i64: 32, 32>}, {pipeline_mode = #tpu.pipeline_mode<synchronous>, transform_indices = @transform_5, window_bounds = array<i64: 6, 32>}, {transform_indices = @transform_6, window_bounds = array<i64: 8, 32>}]} {
    %c0 = arith.constant 0 : index
    %c0_0 = arith.constant 0 : index
    %0 = vector.load %arg6[%c0, %c0_0] : memref<6x32xf32, #tpu.memory_space<vmem>>, vector<6x32xf32>
    %1 = vector.extract_strided_slice %0 {offsets = [0, 0], sizes = [1, 32], strides = [1, 1]} : vector<6x32xf32> to vector<1x32xf32>
    %2 = vector.extract_strided_slice %0 {offsets = [1, 0], sizes = [1, 32], strides = [1, 1]} : vector<6x32xf32> to vector<1x32xf32>
    %3 = vector.extract_strided_slice %0 {offsets = [2, 0], sizes = [1, 32], strides = [1, 1]} : vector<6x32xf32> to vector<1x32xf32>
    %4 = vector.extract_strided_slice %0 {offsets = [3, 0], sizes = [1, 32], strides = [1, 1]} : vector<6x32xf32> to vector<1x32xf32>
    %5 = vector.extract_strided_slice %0 {offsets = [4, 0], sizes = [1, 32], strides = [1, 1]} : vector<6x32xf32> to vector<1x32xf32>
    %6 = vector.extract_strided_slice %0 {offsets = [5, 0], sizes = [1, 32], strides = [1, 1]} : vector<6x32xf32> to vector<1x32xf32>
    %c0_1 = arith.constant 0 : index
    %c0_2 = arith.constant 0 : index
    %7 = vector.load %arg1[%c0_1, %c0_2] : memref<8x32xf32, #tpu.memory_space<vmem>>, vector<8x32xf32>
    %c0_3 = arith.constant 0 : index
    %c0_4 = arith.constant 0 : index
    %8 = vector.load %arg3[%c0_3, %c0_4] : memref<32x32xf32, #tpu.memory_space<vmem>>, vector<32x32xf32>
    %cst = arith.constant dense<0.000000e+00> : vector<8x32xf32>
    %9 = tpu.matmul %7, %8, %cst {dimension_numbers = #tpu.dot_dimension_numbers<[1], [0], [0], [1], [0, 0, 1, 1], [], []>} : vector<8x32xf32>, vector<32x32xf32>, vector<8x32xf32> -> vector<8x32xf32>
    %c0_5 = arith.constant 0 : index
    %c0_6 = arith.constant 0 : index
    %10 = vector.load %arg2[%c0_5, %c0_6] : memref<8x32xf32, #tpu.memory_space<vmem>>, vector<8x32xf32>
    %c0_7 = arith.constant 0 : index
    %c0_8 = arith.constant 0 : index
    %11 = vector.load %arg4[%c0_7, %c0_8] : memref<32x32xf32, #tpu.memory_space<vmem>>, vector<32x32xf32>
    %cst_9 = arith.constant dense<0.000000e+00> : vector<8x32xf32>
    %12 = tpu.matmul %10, %11, %cst_9 {dimension_numbers = #tpu.dot_dimension_numbers<[1], [0], [0], [1], [0, 0, 1, 1], [], []>} : vector<8x32xf32>, vector<32x32xf32>, vector<8x32xf32> -> vector<8x32xf32>
    %13 = arith.addf %9, %12 : vector<8x32xf32>
    %14 = vector.broadcast %1 : vector<1x32xf32> to vector<8x32xf32>
    %15 = arith.addf %13, %14 : vector<8x32xf32>
    %cst_10 = arith.constant dense<0.000000e+00> : vector<8xf32>
    %16 = vector.multi_reduction <add>, %15, %cst_10 [1] : vector<8x32xf32> to vector<8xf32>
    %17 = vector.shape_cast %16 : vector<8xf32> to vector<8x1xf32>
    %cst_11 = arith.constant 3.200000e+01 : f32
    %18 = vector.broadcast %cst_11 : f32 to vector<8x1xf32>
    %19 = arith.divf %17, %18 : vector<8x1xf32>
    %20 = vector.broadcast %19 : vector<8x1xf32> to vector<8x32xf32>
    %21 = arith.subf %15, %20 : vector<8x32xf32>
    %22 = arith.mulf %21, %21 : vector<8x32xf32>
    %cst_12 = arith.constant dense<0.000000e+00> : vector<8xf32>
    %23 = vector.multi_reduction <add>, %22, %cst_12 [1] : vector<8x32xf32> to vector<8xf32>
    %24 = vector.shape_cast %23 : vector<8xf32> to vector<8x1xf32>
    %cst_13 = arith.constant 3.200000e+01 : f32
    %25 = vector.broadcast %cst_13 : f32 to vector<8x1xf32>
    %26 = arith.divf %24, %25 : vector<8x1xf32>
    %27 = vector.broadcast %19 : vector<8x1xf32> to vector<8x32xf32>
    %28 = arith.subf %15, %27 : vector<8x32xf32>
    %cst_14 = arith.constant 9.99999974E-6 : f32
    %29 = vector.broadcast %cst_14 : f32 to vector<8x1xf32>
    %30 = arith.addf %26, %29 : vector<8x1xf32>
    %31 = math.rsqrt %30 : vector<8x1xf32>
    %32 = vector.broadcast %31 : vector<8x1xf32> to vector<8x32xf32>
    %33 = arith.mulf %28, %32 : vector<8x32xf32>
    %34 = vector.broadcast %2 : vector<1x32xf32> to vector<8x32xf32>
    %35 = arith.mulf %33, %34 : vector<8x32xf32>
    %36 = vector.broadcast %3 : vector<1x32xf32> to vector<8x32xf32>
    %37 = arith.addf %35, %36 : vector<8x32xf32>
    %cst_15 = arith.constant 0.000000e+00 : f32
    %38 = vector.broadcast %cst_15 : f32 to vector<8x32xf32>
    %39 = arith.maximumf %37, %38 : vector<8x32xf32>
    %c0_16 = arith.constant 0 : index
    %c0_17 = arith.constant 0 : index
    %40 = vector.load %arg5[%c0_16, %c0_17] : memref<32x32xf32, #tpu.memory_space<vmem>>, vector<32x32xf32>
    %cst_18 = arith.constant dense<0.000000e+00> : vector<8x32xf32>
    %41 = tpu.matmul %39, %40, %cst_18 {dimension_numbers = #tpu.dot_dimension_numbers<[1], [0], [0], [1], [0, 0, 1, 1], [], []>} : vector<8x32xf32>, vector<32x32xf32>, vector<8x32xf32> -> vector<8x32xf32>
    %42 = vector.broadcast %4 : vector<1x32xf32> to vector<8x32xf32>
    %43 = arith.addf %41, %42 : vector<8x32xf32>
    %cst_19 = arith.constant dense<0.000000e+00> : vector<8xf32>
    %44 = vector.multi_reduction <add>, %43, %cst_19 [1] : vector<8x32xf32> to vector<8xf32>
    %45 = vector.shape_cast %44 : vector<8xf32> to vector<8x1xf32>
    %cst_20 = arith.constant 3.200000e+01 : f32
    %46 = vector.broadcast %cst_20 : f32 to vector<8x1xf32>
    %47 = arith.divf %45, %46 : vector<8x1xf32>
    %48 = vector.broadcast %47 : vector<8x1xf32> to vector<8x32xf32>
    %49 = arith.subf %43, %48 : vector<8x32xf32>
    %50 = arith.mulf %49, %49 : vector<8x32xf32>
    %cst_21 = arith.constant dense<0.000000e+00> : vector<8xf32>
    %51 = vector.multi_reduction <add>, %50, %cst_21 [1] : vector<8x32xf32> to vector<8xf32>
    %52 = vector.shape_cast %51 : vector<8xf32> to vector<8x1xf32>
    %cst_22 = arith.constant 3.200000e+01 : f32
    %53 = vector.broadcast %cst_22 : f32 to vector<8x1xf32>
    %54 = arith.divf %52, %53 : vector<8x1xf32>
    %55 = vector.broadcast %47 : vector<8x1xf32> to vector<8x32xf32>
    %56 = arith.subf %43, %55 : vector<8x32xf32>
    %cst_23 = arith.constant 9.99999974E-6 : f32
    %57 = vector.broadcast %cst_23 : f32 to vector<8x1xf32>
    %58 = arith.addf %54, %57 : vector<8x1xf32>
    %59 = math.rsqrt %58 : vector<8x1xf32>
    %60 = vector.broadcast %59 : vector<8x1xf32> to vector<8x32xf32>
    %61 = arith.mulf %56, %60 : vector<8x32xf32>
    %62 = vector.broadcast %5 : vector<1x32xf32> to vector<8x32xf32>
    %63 = arith.mulf %61, %62 : vector<8x32xf32>
    %64 = vector.broadcast %6 : vector<1x32xf32> to vector<8x32xf32>
    %65 = arith.addf %63, %64 : vector<8x32xf32>
    %cst_24 = arith.constant 0.000000e+00 : f32
    %66 = vector.broadcast %cst_24 : f32 to vector<8x32xf32>
    %67 = arith.maximumf %65, %66 : vector<8x32xf32>
    %c0_25 = arith.constant 0 : index
    %c0_26 = arith.constant 0 : index
    %68 = vector.load %arg7[%c0_25, %c0_26] : memref<8x32xf32, #tpu.memory_space<vmem>>, vector<8x32xf32>
    tpu.vector_store %arg7[%c0_25, %c0_26], %67 {strides = array<i32>} : memref<8x32xf32, #tpu.memory_space<vmem>>, vector<8x32xf32>,
    return
  }
  func.func @transform_0(%arg0: i32) -> (i32, i32) {
    %c0_i32 = arith.constant 0 : i32
    %c0_i32_0 = arith.constant 0 : i32
    return %arg0, %c0_i32 : i32, i32
  }
  func.func @transform_1(%arg0: i32) -> (i32, i32) {
    %c0_i32 = arith.constant 0 : i32
    %c0_i32_0 = arith.constant 0 : i32
    return %arg0, %c0_i32 : i32, i32
  }
  func.func @transform_2(%arg0: i32) -> (i32, i32) {
    %c0_i32 = arith.constant 0 : i32
    %c0_i32_0 = arith.constant 0 : i32
    %c0_i32_1 = arith.constant 0 : i32
    return %c0_i32, %c0_i32_0 : i32, i32
  }
  func.func @transform_3(%arg0: i32) -> (i32, i32) {
    %c0_i32 = arith.constant 0 : i32
    %c0_i32_0 = arith.constant 0 : i32
    %c0_i32_1 = arith.constant 0 : i32
    return %c0_i32, %c0_i32_0 : i32, i32
  }
  func.func @transform_4(%arg0: i32) -> (i32, i32) {
    %c0_i32 = arith.constant 0 : i32
    %c0_i32_0 = arith.constant 0 : i32
    %c0_i32_1 = arith.constant 0 : i32
    return %c0_i32, %c0_i32_0 : i32, i32
  }
  func.func @transform_5(%arg0: i32) -> (i32, i32) {
    %c0_i32 = arith.constant 0 : i32
    %c0_i32_0 = arith.constant 0 : i32
    %c0_i32_1 = arith.constant 0 : i32
    return %c0_i32, %c0_i32_0 : i32, i32
  }
  func.func @transform_6(%arg0: i32) -> (i32, i32) {
    %c0_i32 = arith.constant 0 : i32
    %c0_i32_0 = arith.constant 0 : i32
    return %arg0, %c0_i32 : i32, i32
  }
}

module attributes {stable_mosaic.version = 11 : i64} {
  func.func @combiner_kernel(%arg0: i32, %arg1: memref<8x32xf32, #tpu.memory_space<vmem>>, %arg2: memref<8x32xf32, #tpu.memory_space<vmem>>, %arg3: memref<32x32xf32, #tpu.memory_space<vmem>>, %arg4: memref<32x32xf32, #tpu.memory_space<vmem>>, %arg5: memref<32x32xf32, #tpu.memory_space<vmem>>, %arg6: memref<6x32xf32, #tpu.memory_space<vmem>>, %arg7: memref<8x32xf32, #tpu.memory_space<vmem>>) attributes {dimension_semantics = [#tpu.dimension_semantics<parallel>], iteration_bounds = array<i64: 1>, scalar_prefetch = 0 : i64, scratch_operands = 0 : i64, tpu.core_type = #tpu.core_type<tc>, window_params = [{transform_indices = @transform_0, window_bounds = array<i64: 8, 32>}, {transform_indices = @transform_1, window_bounds = array<i64: 8, 32>}, {pipeline_mode = #tpu.pipeline_mode<synchronous>, transform_indices = @transform_2, window_bounds = array<i64: 32, 32>}, {pipeline_mode = #tpu.pipeline_mode<synchronous>, transform_indices = @transform_3, window_bounds = array<i64: 32, 32>}, {pipeline_mode = #tpu.pipeline_mode<synchronous>, transform_indices = @transform_4, window_bounds = array<i64: 32, 32>}, {pipeline_mode = #tpu.pipeline_mode<synchronous>, transform_indices = @transform_5, window_bounds = array<i64: 6, 32>}, {transform_indices = @transform_6, window_bounds = array<i64: 8, 32>}]} {
    %c0 = arith.constant 0 : index
    %c0_0 = arith.constant 0 : index
    %0 = vector.load %arg6[%c0, %c0_0] : memref<6x32xf32, #tpu.memory_space<vmem>>, vector<6x32xf32>
    %1 = vector.extract_strided_slice %0 {offsets = [0, 0], sizes = [1, 32], strides = [1, 1]} : vector<6x32xf32> to vector<1x32xf32>
    %2 = vector.extract_strided_slice %0 {offsets = [1, 0], sizes = [1, 32], strides = [1, 1]} : vector<6x32xf32> to vector<1x32xf32>
    %3 = vector.extract_strided_slice %0 {offsets = [2, 0], sizes = [1, 32], strides = [1, 1]} : vector<6x32xf32> to vector<1x32xf32>
    %4 = vector.extract_strided_slice %0 {offsets = [3, 0], sizes = [1, 32], strides = [1, 1]} : vector<6x32xf32> to vector<1x32xf32>
    %5 = vector.extract_strided_slice %0 {offsets = [4, 0], sizes = [1, 32], strides = [1, 1]} : vector<6x32xf32> to vector<1x32xf32>
    %6 = vector.extract_strided_slice %0 {offsets = [5, 0], sizes = [1, 32], strides = [1, 1]} : vector<6x32xf32> to vector<1x32xf32>
    %c0_1 = arith.constant 0 : index
    %c0_2 = arith.constant 0 : index
    %7 = vector.load %arg1[%c0_1, %c0_2] : memref<8x32xf32, #tpu.memory_space<vmem>>, vector<8x32xf32>
    %c0_3 = arith.constant 0 : index
    %c0_4 = arith.constant 0 : index
    %8 = vector.load %arg3[%c0_3, %c0_4] : memref<32x32xf32, #tpu.memory_space<vmem>>, vector<32x32xf32>
    %cst = arith.constant dense<0.000000e+00> : vector<8x32xf32>
    %9 = tpu.matmul %7, %8, %cst {dimension_numbers = #tpu.dot_dimension_numbers<[1], [0], [0], [1], [0, 0, 1, 1], [], []>} : vector<8x32xf32>, vector<32x32xf32>, vector<8x32xf32> -> vector<8x32xf32>
    %c0_5 = arith.constant 0 : index
    %c0_6 = arith.constant 0 : index
    %10 = vector.load %arg2[%c0_5, %c0_6] : memref<8x32xf32, #tpu.memory_space<vmem>>, vector<8x32xf32>
    %c0_7 = arith.constant 0 : index
    %c0_8 = arith.constant 0 : index
    %11 = vector.load %arg4[%c0_7, %c0_8] : memref<32x32xf32, #tpu.memory_space<vmem>>, vector<32x32xf32>
    %cst_9 = arith.constant dense<0.000000e+00> : vector<8x32xf32>
    %12 = tpu.matmul %10, %11, %cst_9 {dimension_numbers = #tpu.dot_dimension_numbers<[1], [0], [0], [1], [0, 0, 1, 1], [], []>} : vector<8x32xf32>, vector<32x32xf32>, vector<8x32xf32> -> vector<8x32xf32>
    %13 = arith.addf %9, %12 : vector<8x32xf32>
    %14 = vector.broadcast %1 : vector<1x32xf32> to vector<8x32xf32>
    %15 = arith.addf %13, %14 : vector<8x32xf32>
    %cst_10 = arith.constant dense<0.000000e+00> : vector<8xf32>
    %16 = vector.multi_reduction <add>, %15, %cst_10 [1] : vector<8x32xf32> to vector<8xf32>
    %17 = vector.shape_cast %16 : vector<8xf32> to vector<8x1xf32>
    %cst_11 = arith.constant 3.200000e+01 : f32
    %18 = vector.broadcast %cst_11 : f32 to vector<8x1xf32>
    %19 = arith.divf %17, %18 : vector<8x1xf32>
    %20 = vector.broadcast %19 : vector<8x1xf32> to vector<8x32xf32>
    %21 = arith.subf %15, %20 : vector<8x32xf32>
    %22 = arith.mulf %21, %21 : vector<8x32xf32>
    %cst_12 = arith.constant dense<0.000000e+00> : vector<8xf32>
    %23 = vector.multi_reduction <add>, %22, %cst_12 [1] : vector<8x32xf32> to vector<8xf32>
    %24 = vector.shape_cast %23 : vector<8xf32> to vector<8x1xf32>
    %cst_13 = arith.constant 3.200000e+01 : f32
    %25 = vector.broadcast %cst_13 : f32 to vector<8x1xf32>
    %26 = arith.divf %24, %25 : vector<8x1xf32>
    %27 = vector.broadcast %19 : vector<8x1xf32> to vector<8x32xf32>
    %28 = arith.subf %15, %27 : vector<8x32xf32>
    %cst_14 = arith.constant 9.99999974E-6 : f32
    %29 = vector.broadcast %cst_14 : f32 to vector<8x1xf32>
    %30 = arith.addf %26, %29 : vector<8x1xf32>
    %31 = math.rsqrt %30 : vector<8x1xf32>
    %32 = vector.broadcast %31 : vector<8x1xf32> to vector<8x32xf32>
    %33 = arith.mulf %28, %32 : vector<8x32xf32>
    %34 = vector.broadcast %2 : vector<1x32xf32> to vector<8x32xf32>
    %35 = arith.mulf %33, %34 : vector<8x32xf32>
    %36 = vector.broadcast %3 : vector<1x32xf32> to vector<8x32xf32>
    %37 = arith.addf %35, %36 : vector<8x32xf32>
    %cst_15 = arith.constant 0.000000e+00 : f32
    %38 = vector.broadcast %cst_15 : f32 to vector<8x32xf32>
    %39 = arith.maximumf %37, %38 : vector<8x32xf32>
    %c0_16 = arith.constant 0 : index
    %c0_17 = arith.constant 0 : index
    %40 = vector.load %arg5[%c0_16, %c0_17] : memref<32x32xf32, #tpu.memory_space<vmem>>, vector<32x32xf32>
    %cst_18 = arith.constant dense<0.000000e+00> : vector<8x32xf32>
    %41 = tpu.matmul %39, %40, %cst_18 {dimension_numbers = #tpu.dot_dimension_numbers<[1], [0], [0], [1], [0, 0, 1, 1], [], []>} : vector<8x32xf32>, vector<32x32xf32>, vector<8x32xf32> -> vector<8x32xf32>
    %42 = vector.broadcast %4 : vector<1x32xf32> to vector<8x32xf32>
    %43 = arith.addf %41, %42 : vector<8x32xf32>
    %cst_19 = arith.constant dense<0.000000e+00> : vector<8xf32>
    %44 = vector.multi_reduction <add>, %43, %cst_19 [1] : vector<8x32xf32> to vector<8xf32>
    %45 = vector.shape_cast %44 : vector<8xf32> to vector<8x1xf32>
    %cst_20 = arith.constant 3.200000e+01 : f32
    %46 = vector.broadcast %cst_20 : f32 to vector<8x1xf32>
    %47 = arith.divf %45, %46 : vector<8x1xf32>
    %48 = vector.broadcast %47 : vector<8x1xf32> to vector<8x32xf32>
    %49 = arith.subf %43, %48 : vector<8x32xf32>
    %50 = arith.mulf %49, %49 : vector<8x32xf32>
    %cst_21 = arith.constant dense<0.000000e+00> : vector<8xf32>
    %51 = vector.multi_reduction <add>, %50, %cst_21 [1] : vector<8x32xf32> to vector<8xf32>
    %52 = vector.shape_cast %51 : vector<8xf32> to vector<8x1xf32>
    %cst_22 = arith.constant 3.200000e+01 : f32
    %53 = vector.broadcast %cst_22 : f32 to vector<8x1xf32>
    %54 = arith.divf %52, %53 : vector<8x1xf32>
    %55 = vector.broadcast %47 : vector<8x1xf32> to vector<8x32xf32>
    %56 = arith.subf %43, %55 : vector<8x32xf32>
    %cst_23 = arith.constant 9.99999974E-6 : f32
    %57 = vector.broadcast %cst_23 : f32 to vector<8x1xf32>
    %58 = arith.addf %54, %57 : vector<8x1xf32>
    %59 = math.rsqrt %58 : vector<8x1xf32>
    %60 = vector.broadcast %59 : vector<8x1xf32> to vector<8x32xf32>
    %61 = arith.mulf %56, %60 : vector<8x32xf32>
    %62 = vector.broadcast %5 : vector<1x32xf32> to vector<8x32xf32>
    %63 = arith.mulf %61, %62 : vector<8x32xf32>
    %64 = vector.broadcast %6 : vector<1x32xf32> to vector<8x32xf32>
    %65 = arith.addf %63, %64 : vector<8x32xf32>
    %cst_24 = arith.constant 0.000000e+00 : f32
    %66 = vector.broadcast %cst_24 : f32 to vector<8x32xf32>
    %67 = arith.maximumf %65, %66 : vector<8x32xf32>
    %c0_25 = arith.constant 0 : index
    %c0_26 = arith.constant 0 : index
    %68 = vector.load %arg7[%c0_25, %c0_26] : memref<8x32xf32, #tpu.memory_space<vmem>>, vector<8x32xf32>
    tpu.vector_store %arg7[%c0_25, %c0_26], %67 {strides = array<i32>} : memref<8x32xf32, #tpu.memory_space<vmem>>, vector<8x32xf32>,
    return
  }
  func.func @transform_0(%arg0: i32) -> (i32, i32) {
    %c0_i32 = arith.constant 0 : i32
    %c0_i32_0 = arith.constant 0 : i32
    return %arg0, %c0_i32 : i32, i32
  }
  func.func @transform_1(%arg0: i32) -> (i32, i32) {
    %c0_i32 = arith.constant 0 : i32
    %c0_i32_0 = arith.constant 0 : i32
    return %arg0, %c0_i32 : i32, i32
  }
  func.func @transform_2(%arg0: i32) -> (i32, i32) {
    %c0_i32 = arith.constant 0 : i32
    %c0_i32_0 = arith.constant 0 : i32
    %c0_i32_1 = arith.constant 0 : i32
    return %c0_i32, %c0_i32_0 : i32, i32
  }
  func.func @transform_3(%arg0: i32) -> (i32, i32) {
    %c0_i32 = arith.constant 0 : i32
    %c0_i32_0 = arith.constant 0 : i32
    %c0_i32_1 = arith.constant 0 : i32
    return %c0_i32, %c0_i32_0 : i32, i32
  }
  func.func @transform_4(%arg0: i32) -> (i32, i32) {
    %c0_i32 = arith.constant 0 : i32
    %c0_i32_0 = arith.constant 0 : i32
    %c0_i32_1 = arith.constant 0 : i32
    return %c0_i32, %c0_i32_0 : i32, i32
  }
  func.func @transform_5(%arg0: i32) -> (i32, i32) {
    %c0_i32 = arith.constant 0 : i32
    %c0_i32_0 = arith.constant 0 : i32
    %c0_i32_1 = arith.constant 0 : i32
    return %c0_i32, %c0_i32_0 : i32, i32
  }
  func.func @transform_6(%arg0: i32) -> (i32, i32) {
    %c0_i32 = arith.constant 0 : i32
    %c0_i32_0 = arith.constant 0 : i32
    return %arg0, %c0_i32 : i32, i32
  }
}

</mosaic_0001>

<bundles_post_ra>
// kernel: tpu_custom_call.1
= control target key start
LH: loop header
LB: loop body
LE: loop exit
PB: predicated region body
PF: predicated region fallthrough
CT: control target
= control target key end

     0   :  { %11 = vsyncpa [#allocation3], 0  ;;  %s561_s0 = inlined_call_operand.hbm [shape: f32[8,32], index: 0, kind: input, shape index: {}]   ;;  %s562_s1 = inlined_call_operand.hbm [shape: f32[8,32], index: 1, kind: input, shape index: {}]   ;;  %s563_s2 = inlined_call_operand.hbm [shape: f32[32,32], index: 2, kind: input, shape index: {}]   ;;  %s564_s3 = inlined_call_operand.hbm [shape: f32[32,32], index: 3, kind: input, shape index: {}]   ;;  %s565_s4 = inlined_call_operand.hbm [shape: f32[32,32], index: 4, kind: input, shape index: {}]   ;;  %s566_s5 = inlined_call_operand.hbm [shape: f32[6,32], index: 5, kind: input, shape index: {}]   ;;  %s567_s6 = inlined_call_operand.hbm [shape: f32[8,32], index: 6, kind: output, shape index: {}]  }
   0x1   :  { %12 = vsyncpa [#allocation6], 0 }
   0x2   :  { %13 = vsyncpa [#allocation9], 0 }
   0x3   :  { %14 = vsyncpa [#allocation12], 0  ;;  %s32_s23 = sshll.u32 %s562_s1, 4  ;;  %s33_s23 = int_to_ptr.hbm [resolvable:$true] %s32_s23 }
   0x4   :  { %15 = vsyncpa [#allocation4], 0  ;;  %s479_s24 = smov [#allocation5]   ;;  %s55_s28 = sshll.u32 %s564_s3, 4  ;;  %s56_s28 = int_to_ptr.hbm [resolvable:$true] %s55_s28 }
   0x5   :  { %s34_s25 = sshll.u32 %s479_s24, 4  ;;  %s480_s29 = smov [#allocation8]   ;;  %s35_s25 = int_to_ptr.vmem [resolvable:$true] %s34_s25 }
   0x6   :  { %37 = dma.hbm_to_vmem [thread:$0]  %s33_s23, 128, %s35_s25, [#allocation6]  }
   0x7   :  { %s57_s30 = sshll.u32 %s480_s29, 4  ;;  %s21_s9 = sshll.u32 %s561_s0, 4  ;;  %s58_s30 = int_to_ptr.vmem [resolvable:$true] %s57_s30  ;;  %s22_s9 = int_to_ptr.hbm [resolvable:$true] %s21_s9 }
   0x8   :  { %s481_s1 = smov 128   ;;  %s482_s10 = smov 8  }
   0x9   :  { %63 = dma.hbm_to_vmem [thread:$0]  %s56_s28, 512, %s58_s30, [#allocation9], %s481_s1, %s481_s1, %s482_s10  }
   0xa   :  { %s42_s13 = sshll.u32 %s563_s2, 4  ;;  %s483_s14 = smov [#allocation2]   ;;  %s43_s13 = int_to_ptr.hbm [resolvable:$true] %s42_s13 }
   0xb   :  { %s23_s15 = sshll.u32 %s483_s14, 4  ;;  %s484_s3 = smov [#allocation7]   ;;  %s24_s15 = int_to_ptr.vmem [resolvable:$true] %s23_s15 }
   0xc   :  { %26 = dma.hbm_to_vmem [thread:$0]  %s22_s9, 128, %s24_s15, [#allocation3]  }
   0xd   :  { %s44_s16 = sshll.u32 %s484_s3, 4  ;;  %s68_s0 = sshll.u32 %s565_s4, 4  ;;  %s45_s16 = int_to_ptr.vmem [resolvable:$true] %s44_s16  ;;  %s69_s0 = int_to_ptr.hbm [resolvable:$true] %s68_s0 }
   0xe   :  { %50 = dma.hbm_to_vmem [thread:$0]  %s43_s13, 512, %s45_s16, [#allocation6], %s481_s1, %s481_s1, %s482_s10  }
   0xf   :  { %s82_s21 = sshll.u32 %s566_s5, 4  ;;  %s485_s22 = smov [#allocation10]   ;;  %s83_s21 = int_to_ptr.hbm [resolvable:$true] %s82_s21 }
  0x10   :  { %s70_s2 = sshll.u32 %s485_s22, 4  ;;  %s486_s23 = smov [#allocation11]   ;;  %s71_s2 = int_to_ptr.vmem [resolvable:$true] %s70_s2 }
  0x11   :  { %76 = dma.hbm_to_vmem [thread:$0]  %s69_s0, 512, %s71_s2, [#allocation9], %s481_s1, %s481_s1, %s482_s10  }
  0x12   :  { %s84_s24 = sshll.u32 %s486_s23, 4  ;;  %s85_s24 = int_to_ptr.vmem [resolvable:$true] %s84_s24 }
  0x13   :  { %87 = dma.hbm_to_vmem [thread:$0]  %s83_s21, 128, %s85_s24, [#allocation12]  }
  0x14   :  { %469 = dma.done.wait [#allocation3], 128  }
  0x15   :  { %470 = vsyncadd [#allocation3], 4294967168 }
  0x16   :  { %471 = dma.done.wait [#allocation6], 640  }
  0x17   :  { %472 = vsyncadd [#allocation6], 4294966656 }
  0x18   :  { %473 = dma.done.wait [#allocation9], 1024  }
  0x19   :  { %474 = vsyncadd [#allocation9], 4294966272 }
  0x1a   :  { %475 = dma.done.wait [#allocation12], 128  }
  0x1b   :  { %476 = vsyncadd [#allocation12], 4294967168  ;;  %v122_v0 = vld [vmem:[#allocation8 + $0x18] sm:$0xff]  ;;  %v121_v2 = vld [vmem:[#allocation8 + $0x10] sm:$0xff]  ;;  %vm123_vm0 = vcmask 261120   ;;  %v487_v17 = vmov 32.0  }
  0x1c   :  { %v117_v1 = vld [vmem:[#allocation7 + $0x18] sm:$0xff]  ;;  %139 = vmatpush.msra.mxu0 %v122_v0  ;;  %v116_v3 = vld [vmem:[#allocation7 + $0x10] sm:$0xff]  ;;  %v120_v4 = vld [vmem:[#allocation8 + $0x8] sm:$0xff]  ;;  %295 = vrcp.f32 %v487_v17  ;;  %s488_s4 = smov [#allocation13]   ;;  %s269_s27 = sshll.u32 %s567_s6, 4  ;;  %s270_s27 = int_to_ptr.hbm [resolvable:$true] %s269_s27 }
  0x1d   :  { %162 = vmatpush.msra.mxu1 %v117_v1  ;;  %v115_v5 = vld [vmem:[#allocation7 + $0x8] sm:$0xff]  ;;  %v119_v6 = vld [vmem:[#allocation8] sm:$0xff]  ;;  %v118_v8 = vld [vmem:[#allocation5] sm:$0xff]  ;;  %s267_s5 = sshll.u32 %s488_s4, 4  ;;  %s268_s5 = int_to_ptr.vmem [resolvable:$true] %s267_s5 }
  0x1e   :  { %140 = vmatpush.msra.mxu0 %v121_v2  ;;  %v114_v7 = vld [vmem:[#allocation7] sm:$0xff]  ;;  %v113_v9 = vld [vmem:[#allocation2] sm:$0xff]  ;;  %v209_v29 = vld [vmem:[#allocation10 + $0x18] sm:$0xff] }
  0x1f   :  { %163 = vmatpush.msra.mxu1 %v116_v3  ;;  %v544_v10 = vld [vmem:[#allocation11] sm:$0x3f]  ;;  %v208_v30 = vld [vmem:[#allocation10 + $0x10] sm:$0xff]  ;;  %226 = vmatpush.msra.mxu2 %v209_v29  ;;  %v207_v31 = vld [vmem:[#allocation10 + $0x8] sm:$0xff] }
  0x20   :  { %141 = vmatpush.msra.mxu0 %v120_v4  ;;  %v170_v11 = vperm.slane %v544_v10, 0  ;;  %v206_v32 = vld [vmem:[#allocation10] sm:$0xff]  ;;  %v201_v42 = vperm.slane %v544_v10, 1  ;;  %v203_v45 = vperm.slane %v544_v10, 2  ;;  %v210_v49 = vperm.slane %v544_v10, 3 }
  0x21   :  { %164 = vmatpush.msra.mxu1 %v115_v5  ;;  %227 = vmatpush.msra.mxu2 %v208_v30  ;;  %v256_v3 = vperm.slane %v544_v10, 4 }
  0x22   :  { %142 = vmatpush.msra.mxu0 %v119_v6  ;;  %v296_v18 = vpop.eup %295  ;;  %v258_v6 = vperm.slane %v544_v10, 5 }
  0x23   :  { %165 = vmatpush.msra.mxu1 %v114_v7  ;;  %282 = vmatmul.msk.f32.vlgmr.msra.gmra.mxu0 %vm123_vm0, %v118_v8  ;;  %v176_v19 = vmul.f32 32.0, %v296_v18  ;;  %vm180_vm1 = vweird.f32 %v296_v18 }
  0x24   :  { %283 = vmatmul.msk.f32.vlgmr.msra.gmra.mxu1 %vm123_vm0, %v113_v9  ;;  %228 = vmatpush.msra.mxu2 %v207_v31 }
  0x25   :  { %v177_v20 = vsub.f32 1.0, %v176_v19 }
  0x26   :  { %229 = vmatpush.msra.mxu2 %v206_v32 }
  0x27   :  { %v178_v21 = vmul.f32 %v296_v18, %v177_v20 }
  0x29   :  { %v179_v22 = vadd.f32 %v296_v18, %v178_v21 }
  0x2b   :  { %v181_v23 = vsel %vm180_vm1, %v296_v18, %v179_v22 }
  0xa0   :  { %v144_v12 = vpop.f32.mrf.mxu0 }
  0xa1   :  { %v167_v13 = vpop.f32.mrf.mxu1 }
  0xa2   :  { %v168_v14 = vadd.f32 %v167_v13, %v144_v12 }
  0xa4   :  { %v171_v15 = vadd.f32 %v170_v11, %v168_v14 }
  0xa6   :  { %v172_v16 = vsel %vm123_vm0, %v171_v15, 0.0 }
  0xa7   :  { %173 = vadd.xlane.f32.xlu0 %v172_v16 }
 0x11a   :  { %v174_v24 = vpop.xlane.xlu0 %173 }
 0x11b   :  { %v182_v25 = vmul.f32 %v181_v23, %v174_v24 }
 0x11d   :  { %v183_v26 = vsub.f32 %v171_v15, %v182_v25 }
 0x11f   :  { %v184_v27 = vmul.f32 %v183_v26, %v183_v26 }
 0x121   :  { %v185_v28 = vsel %vm123_vm0, %v184_v27, 0.0 }
 0x122   :  { %186 = vadd.xlane.f32.xlu0 %v185_v28 }
 0x195   :  { %v187_v33 = vpop.xlane.xlu0 %186 }
 0x196   :  { %v188_v34 = vmul.f32 %v187_v33, %v181_v23 }
 0x198   :  { %v189_v35 = vadd.f32 1e-05, %v188_v34 }
 0x19a   :  { %297 = vrsqrt.f32 %v189_v35  ;;  %vm196_vm3 = vweird.f32 %v189_v35 }
 0x1a0   :  { %v298_v36 = vpop.eup %297 }
 0x1a1   :  { %v191_v37 = vmul.f32 %v298_v36, %v189_v35  ;;  %vm197_vm2 = vweird.f32 %v298_v36 }
 0x1a2   :  { %vm198_vm4 = vmor %vm196_vm3, %vm197_vm2 }
 0x1a3   :  { %v192_v38 = vmul.f32 %v298_v36, %v191_v37 }
 0x1a5   :  { %v193_v39 = vmul.f32 0.5, %v192_v38 }
 0x1a7   :  { %v194_v40 = vsub.f32 1.5, %v193_v39 }
 0x1a9   :  { %v195_v41 = vmul.f32 %v298_v36, %v194_v40 }
 0x1ab   :  { %v199_v43 = vsel %vm198_vm4, %v298_v36, %v195_v41 }
 0x1ac   :  { %v200_v44 = vmul.f32 %v199_v43, %v183_v26 }
 0x1ae   :  { %v202_v46 = vmul.f32 %v201_v42, %v200_v44 }
 0x1b0   :  { %v204_v47 = vadd.f32 %v203_v45, %v202_v46 }
 0x1b2   :  { %v205_v48 = vmax.f32 %v204_v47, 0.0 }
 0x1b4   :  { %284 = vmatmul.msk.f32.vlgmr.msra.gmra.mxu2 %vm123_vm0, %v205_v48 }
 0x237   :  { %v231_v50 = vpop.f32.mrf.mxu2 }
 0x238   :  { %v232_v51 = vadd.f32 %v231_v50, %v210_v49 }
 0x23a   :  { %v234_v52 = vsel %vm123_vm0, %v232_v51, 0.0 }
 0x23b   :  { %235 = vadd.xlane.f32.xlu1 %v234_v52 }
 0x2ae   :  { %v236_v53 = vpop.xlane.xlu1 %235 }
 0x2af   :  { %v237_v54 = vmul.f32 %v236_v53, %v181_v23 }
 0x2b1   :  { %v238_v55 = vsub.f32 %v232_v51, %v237_v54 }
 0x2b3   :  { %v239_v56 = vmul.f32 %v238_v55, %v238_v55 }
 0x2b5   :  { %v240_v57 = vsel %vm123_vm0, %v239_v56, 0.0 }
 0x2b6   :  { %241 = vadd.xlane.f32.xlu1 %v240_v57 }
 0x329   :  { %v242_v58 = vpop.xlane.xlu1 %241 }
 0x32a   :  { %v243_v59 = vmul.f32 %v242_v58, %v181_v23 }
 0x32c   :  { %v244_v60 = vadd.f32 1e-05, %v243_v59 }
 0x32e   :  { %299 = vrsqrt.f32 %v244_v60  ;;  %vm251_vm6 = vweird.f32 %v244_v60 }
 0x334   :  { %v300_v61 = vpop.eup %299 }
 0x335   :  { %v246_v62 = vmul.f32 %v300_v61, %v244_v60  ;;  %vm252_vm5 = vweird.f32 %v300_v61 }
 0x336   :  { %vm253_vm7 = vmor %vm251_vm6, %vm252_vm5 }
 0x337   :  { %v247_v63 = vmul.f32 %v300_v61, %v246_v62 }
 0x339   :  { %v248_v0 = vmul.f32 0.5, %v247_v63 }
 0x33b   :  { %v249_v1 = vsub.f32 1.5, %v248_v0 }
 0x33d   :  { %v250_v2 = vmul.f32 %v300_v61, %v249_v1 }
 0x33f   :  { %v254_v4 = vsel %vm253_vm7, %v300_v61, %v250_v2 }
 0x340   :  { %v255_v5 = vmul.f32 %v254_v4, %v238_v55 }
 0x342   :  { %v257_v7 = vmul.f32 %v256_v3, %v255_v5 }
 0x344   :  { %v259_v8 = vadd.f32 %v258_v6, %v257_v7 }
 0x346   :  { %v260_v9 = vmax.f32 %v259_v8, 0.0 }
 0x348   :  { %261 = vst.msk [vmem:[#allocation13] sm:$0xff] %vm123_vm0, %v260_v9 }
 0x349   :  { %272 = dma.vmem_to_hbm [thread:$0]  %s268_s5, 128, %s270_s27, [#allocation4]  }
 0x34a   :  { %477 = dma.done.wait [#allocation4], 128  }
 0x34b   :  { %478 = vsyncadd [#allocation4], 4294967168 }
 0x34c   :  { %277 = vsyncpa [#allocation3], 1 }
 0x34d   :  { %278 = vsyncpa [#allocation6], 1 }
 0x34e   :  { %279 = vsyncpa [#allocation9], 1 }
 0x34f   :  { %280 = vsyncpa [#allocation12], 1 }
 0x350   :  { %281 = vsyncpa [#allocation4], 1 }

// kernel: tpu_custom_call.1
= control target key start
LH: loop header
LB: loop body
LE: loop exit
PB: predicated region body
PF: predicated region fallthrough
CT: control target
= control target key end

     0   :  { %11 = vsyncpa [#allocation3], 0  ;;  %s561_s0 = inlined_call_operand.hbm [shape: f32[8,32], index: 0, kind: input, shape index: {}]   ;;  %s562_s1 = inlined_call_operand.hbm [shape: f32[8,32], index: 1, kind: input, shape index: {}]   ;;  %s563_s2 = inlined_call_operand.hbm [shape: f32[32,32], index: 2, kind: input, shape index: {}]   ;;  %s564_s3 = inlined_call_operand.hbm [shape: f32[32,32], index: 3, kind: input, shape index: {}]   ;;  %s565_s4 = inlined_call_operand.hbm [shape: f32[32,32], index: 4, kind: input, shape index: {}]   ;;  %s566_s5 = inlined_call_operand.hbm [shape: f32[6,32], index: 5, kind: input, shape index: {}]   ;;  %s567_s6 = inlined_call_operand.hbm [shape: f32[8,32], index: 6, kind: output, shape index: {}]  }
   0x1   :  { %12 = vsyncpa [#allocation6], 0 }
   0x2   :  { %13 = vsyncpa [#allocation9], 0 }
   0x3   :  { %14 = vsyncpa [#allocation12], 0  ;;  %s32_s23 = sshll.u32 %s562_s1, 4  ;;  %s33_s23 = int_to_ptr.hbm [resolvable:$true] %s32_s23 }
   0x4   :  { %15 = vsyncpa [#allocation4], 0  ;;  %s479_s24 = smov [#allocation5]   ;;  %s55_s28 = sshll.u32 %s564_s3, 4  ;;  %s56_s28 = int_to_ptr.hbm [resolvable:$true] %s55_s28 }
   0x5   :  { %s34_s25 = sshll.u32 %s479_s24, 4  ;;  %s480_s29 = smov [#allocation8]   ;;  %s35_s25 = int_to_ptr.vmem [resolvable:$true] %s34_s25 }
   0x6   :  { %37 = dma.hbm_to_vmem [thread:$0]  %s33_s23, 128, %s35_s25, [#allocation6]  }
   0x7   :  { %s57_s30 = sshll.u32 %s480_s29, 4  ;;  %s21_s9 = sshll.u32 %s561_s0, 4  ;;  %s58_s30 = int_to_ptr.vmem [resolvable:$true] %s57_s30  ;;  %s22_s9 = int_to_ptr.hbm [resolvable:$true] %s21_s9 }
   0x8   :  { %s481_s1 = smov 128   ;;  %s482_s10 = smov 8  }
   0x9   :  { %63 = dma.hbm_to_vmem [thread:$0]  %s56_s28, 512, %s58_s30, [#allocation9], %s481_s1, %s481_s1, %s482_s10  }
   0xa   :  { %s42_s13 = sshll.u32 %s563_s2, 4  ;;  %s483_s14 = smov [#allocation2]   ;;  %s43_s13 = int_to_ptr.hbm [resolvable:$true] %s42_s13 }
   0xb   :  { %s23_s15 = sshll.u32 %s483_s14, 4  ;;  %s484_s3 = smov [#allocation7]   ;;  %s24_s15 = int_to_ptr.vmem [resolvable:$true] %s23_s15 }
   0xc   :  { %26 = dma.hbm_to_vmem [thread:$0]  %s22_s9, 128, %s24_s15, [#allocation3]  }
   0xd   :  { %s44_s16 = sshll.u32 %s484_s3, 4  ;;  %s68_s0 = sshll.u32 %s565_s4, 4  ;;  %s45_s16 = int_to_ptr.vmem [resolvable:$true] %s44_s16  ;;  %s69_s0 = int_to_ptr.hbm [resolvable:$true] %s68_s0 }
   0xe   :  { %50 = dma.hbm_to_vmem [thread:$0]  %s43_s13, 512, %s45_s16, [#allocation6], %s481_s1, %s481_s1, %s482_s10  }
   0xf   :  { %s82_s21 = sshll.u32 %s566_s5, 4  ;;  %s485_s22 = smov [#allocation10]   ;;  %s83_s21 = int_to_ptr.hbm [resolvable:$true] %s82_s21 }
  0x10   :  { %s70_s2 = sshll.u32 %s485_s22, 4  ;;  %s486_s23 = smov [#allocation11]   ;;  %s71_s2 = int_to_ptr.vmem [resolvable:$true] %s70_s2 }
  0x11   :  { %76 = dma.hbm_to_vmem [thread:$0]  %s69_s0, 512, %s71_s2, [#allocation9], %s481_s1, %s481_s1, %s482_s10  }
  0x12   :  { %s84_s24 = sshll.u32 %s486_s23, 4  ;;  %s85_s24 = int_to_ptr.vmem [resolvable:$true] %s84_s24 }
  0x13   :  { %87 = dma.hbm_to_vmem [thread:$0]  %s83_s21, 128, %s85_s24, [#allocation12]  }
  0x14   :  { %469 = dma.done.wait [#allocation3], 128  }
  0x15   :  { %470 = vsyncadd [#allocation3], 4294967168 }
  0x16   :  { %471 = dma.done.wait [#allocation6], 640  }
  0x17   :  { %472 = vsyncadd [#allocation6], 4294966656 }
  0x18   :  { %473 = dma.done.wait [#allocation9], 1024  }
  0x19   :  { %474 = vsyncadd [#allocation9], 4294966272 }
  0x1a   :  { %475 = dma.done.wait [#allocation12], 128  }
  0x1b   :  { %476 = vsyncadd [#allocation12], 4294967168  ;;  %v122_v0 = vld [vmem:[#allocation8 + $0x18] sm:$0xff]  ;;  %v121_v2 = vld [vmem:[#allocation8 + $0x10] sm:$0xff]  ;;  %vm123_vm0 = vcmask 261120   ;;  %v487_v17 = vmov 32.0  }
  0x1c   :  { %v117_v1 = vld [vmem:[#allocation7 + $0x18] sm:$0xff]  ;;  %139 = vmatpush.msra.mxu0 %v122_v0  ;;  %v116_v3 = vld [vmem:[#allocation7 + $0x10] sm:$0xff]  ;;  %v120_v4 = vld [vmem:[#allocation8 + $0x8] sm:$0xff]  ;;  %295 = vrcp.f32 %v487_v17  ;;  %s488_s4 = smov [#allocation13]   ;;  %s269_s27 = sshll.u32 %s567_s6, 4  ;;  %s270_s27 = int_to_ptr.hbm [resolvable:$true] %s269_s27 }
  0x1d   :  { %162 = vmatpush.msra.mxu1 %v117_v1  ;;  %v115_v5 = vld [vmem:[#allocation7 + $0x8] sm:$0xff]  ;;  %v119_v6 = vld [vmem:[#allocation8] sm:$0xff]  ;;  %v118_v8 = vld [vmem:[#allocation5] sm:$0xff]  ;;  %s267_s5 = sshll.u32 %s488_s4, 4  ;;  %s268_s5 = int_to_ptr.vmem [resolvable:$true] %s267_s5 }
  0x1e   :  { %140 = vmatpush.msra.mxu0 %v121_v2  ;;  %v114_v7 = vld [vmem:[#allocation7] sm:$0xff]  ;;  %v113_v9 = vld [vmem:[#allocation2] sm:$0xff]  ;;  %v209_v29 = vld [vmem:[#allocation10 + $0x18] sm:$0xff] }
  0x1f   :  { %163 = vmatpush.msra.mxu1 %v116_v3  ;;  %v544_v10 = vld [vmem:[#allocation11] sm:$0x3f]  ;;  %v208_v30 = vld [vmem:[#allocation10 + $0x10] sm:$0xff]  ;;  %226 = vmatpush.msra.mxu2 %v209_v29  ;;  %v207_v31 = vld [vmem:[#allocation10 + $0x8] sm:$0xff] }
  0x20   :  { %141 = vmatpush.msra.mxu0 %v120_v4  ;;  %v170_v11 = vperm.slane %v544_v10, 0  ;;  %v206_v32 = vld [vmem:[#allocation10] sm:$0xff]  ;;  %v201_v42 = vperm.slane %v544_v10, 1  ;;  %v203_v45 = vperm.slane %v544_v10, 2  ;;  %v210_v49 = vperm.slane %v544_v10, 3 }
  0x21   :  { %164 = vmatpush.msra.mxu1 %v115_v5  ;;  %227 = vmatpush.msra.mxu2 %v208_v30  ;;  %v256_v3 = vperm.slane %v544_v10, 4 }
  0x22   :  { %142 = vmatpush.msra.mxu0 %v119_v6  ;;  %v296_v18 = vpop.eup %295  ;;  %v258_v6 = vperm.slane %v544_v10, 5 }
  0x23   :  { %165 = vmatpush.msra.mxu1 %v114_v7  ;;  %282 = vmatmul.msk.f32.vlgmr.msra.gmra.mxu0 %vm123_vm0, %v118_v8  ;;  %v176_v19 = vmul.f32 32.0, %v296_v18  ;;  %vm180_vm1 = vweird.f32 %v296_v18 }
  0x24   :  { %283 = vmatmul.msk.f32.vlgmr.msra.gmra.mxu1 %vm123_vm0, %v113_v9  ;;  %228 = vmatpush.msra.mxu2 %v207_v31 }
  0x25   :  { %v177_v20 = vsub.f32 1.0, %v176_v19 }
  0x26   :  { %229 = vmatpush.msra.mxu2 %v206_v32 }
  0x27   :  { %v178_v21 = vmul.f32 %v296_v18, %v177_v20 }
  0x29   :  { %v179_v22 = vadd.f32 %v296_v18, %v178_v21 }
  0x2b   :  { %v181_v23 = vsel %vm180_vm1, %v296_v18, %v179_v22 }
  0xa0   :  { %v144_v12 = vpop.f32.mrf.mxu0 }
  0xa1   :  { %v167_v13 = vpop.f32.mrf.mxu1 }
  0xa2   :  { %v168_v14 = vadd.f32 %v167_v13, %v144_v12 }
  0xa4   :  { %v171_v15 = vadd.f32 %v170_v11, %v168_v14 }
  0xa6   :  { %v172_v16 = vsel %vm123_vm0, %v171_v15, 0.0 }
  0xa7   :  { %173 = vadd.xlane.f32.xlu0 %v172_v16 }
 0x11a   :  { %v174_v24 = vpop.xlane.xlu0 %173 }
 0x11b   :  { %v182_v25 = vmul.f32 %v181_v23, %v174_v24 }
 0x11d   :  { %v183_v26 = vsub.f32 %v171_v15, %v182_v25 }
 0x11f   :  { %v184_v27 = vmul.f32 %v183_v26, %v183_v26 }
 0x121   :  { %v185_v28 = vsel %vm123_vm0, %v184_v27, 0.0 }
 0x122   :  { %186 = vadd.xlane.f32.xlu0 %v185_v28 }
 0x195   :  { %v187_v33 = vpop.xlane.xlu0 %186 }
 0x196   :  { %v188_v34 = vmul.f32 %v187_v33, %v181_v23 }
 0x198   :  { %v189_v35 = vadd.f32 1e-05, %v188_v34 }
 0x19a   :  { %297 = vrsqrt.f32 %v189_v35  ;;  %vm196_vm3 = vweird.f32 %v189_v35 }
 0x1a0   :  { %v298_v36 = vpop.eup %297 }
 0x1a1   :  { %v191_v37 = vmul.f32 %v298_v36, %v189_v35  ;;  %vm197_vm2 = vweird.f32 %v298_v36 }
 0x1a2   :  { %vm198_vm4 = vmor %vm196_vm3, %vm197_vm2 }
 0x1a3   :  { %v192_v38 = vmul.f32 %v298_v36, %v191_v37 }
 0x1a5   :  { %v193_v39 = vmul.f32 0.5, %v192_v38 }
 0x1a7   :  { %v194_v40 = vsub.f32 1.5, %v193_v39 }
 0x1a9   :  { %v195_v41 = vmul.f32 %v298_v36, %v194_v40 }
 0x1ab   :  { %v199_v43 = vsel %vm198_vm4, %v298_v36, %v195_v41 }
 0x1ac   :  { %v200_v44 = vmul.f32 %v199_v43, %v183_v26 }
 0x1ae   :  { %v202_v46 = vmul.f32 %v201_v42, %v200_v44 }
 0x1b0   :  { %v204_v47 = vadd.f32 %v203_v45, %v202_v46 }
 0x1b2   :  { %v205_v48 = vmax.f32 %v204_v47, 0.0 }
 0x1b4   :  { %284 = vmatmul.msk.f32.vlgmr.msra.gmra.mxu2 %vm123_vm0, %v205_v48 }
 0x237   :  { %v231_v50 = vpop.f32.mrf.mxu2 }
 0x238   :  { %v232_v51 = vadd.f32 %v231_v50, %v210_v49 }
 0x23a   :  { %v234_v52 = vsel %vm123_vm0, %v232_v51, 0.0 }
 0x23b   :  { %235 = vadd.xlane.f32.xlu1 %v234_v52 }
 0x2ae   :  { %v236_v53 = vpop.xlane.xlu1 %235 }
 0x2af   :  { %v237_v54 = vmul.f32 %v236_v53, %v181_v23 }
 0x2b1   :  { %v238_v55 = vsub.f32 %v232_v51, %v237_v54 }
 0x2b3   :  { %v239_v56 = vmul.f32 %v238_v55, %v238_v55 }
 0x2b5   :  { %v240_v57 = vsel %vm123_vm0, %v239_v56, 0.0 }
 0x2b6   :  { %241 = vadd.xlane.f32.xlu1 %v240_v57 }
 0x329   :  { %v242_v58 = vpop.xlane.xlu1 %241 }
 0x32a   :  { %v243_v59 = vmul.f32 %v242_v58, %v181_v23 }
 0x32c   :  { %v244_v60 = vadd.f32 1e-05, %v243_v59 }
 0x32e   :  { %299 = vrsqrt.f32 %v244_v60  ;;  %vm251_vm6 = vweird.f32 %v244_v60 }
 0x334   :  { %v300_v61 = vpop.eup %299 }
 0x335   :  { %v246_v62 = vmul.f32 %v300_v61, %v244_v60  ;;  %vm252_vm5 = vweird.f32 %v300_v61 }
 0x336   :  { %vm253_vm7 = vmor %vm251_vm6, %vm252_vm5 }
 0x337   :  { %v247_v63 = vmul.f32 %v300_v61, %v246_v62 }
 0x339   :  { %v248_v0 = vmul.f32 0.5, %v247_v63 }
 0x33b   :  { %v249_v1 = vsub.f32 1.5, %v248_v0 }
 0x33d   :  { %v250_v2 = vmul.f32 %v300_v61, %v249_v1 }
 0x33f   :  { %v254_v4 = vsel %vm253_vm7, %v300_v61, %v250_v2 }
 0x340   :  { %v255_v5 = vmul.f32 %v254_v4, %v238_v55 }
 0x342   :  { %v257_v7 = vmul.f32 %v256_v3, %v255_v5 }
 0x344   :  { %v259_v8 = vadd.f32 %v258_v6, %v257_v7 }
 0x346   :  { %v260_v9 = vmax.f32 %v259_v8, 0.0 }
 0x348   :  { %261 = vst.msk [vmem:[#allocation13] sm:$0xff] %vm123_vm0, %v260_v9 }
 0x349   :  { %272 = dma.vmem_to_hbm [thread:$0]  %s268_s5, 128, %s270_s27, [#allocation4]  }
 0x34a   :  { %477 = dma.done.wait [#allocation4], 128  }
 0x34b   :  { %478 = vsyncadd [#allocation4], 4294967168 }
 0x34c   :  { %277 = vsyncpa [#allocation3], 1 }
 0x34d   :  { %278 = vsyncpa [#allocation6], 1 }
 0x34e   :  { %279 = vsyncpa [#allocation9], 1 }
 0x34f   :  { %280 = vsyncpa [#allocation12], 1 }
 0x350   :  { %281 = vsyncpa [#allocation4], 1 }

</bundles_post_ra>
